<compile_context>
chip_gen: v5e
topology: v5e:2x2
jax: 0.10.0
libtpu: 0.0.40
codegen_flags: <defaults>
</compile_context>

<pallas_src>
import math
import jax
import jax.numpy as jnp
from jax.experimental import pallas as pl
from jax.experimental.pallas import tpu as pltpu


def gat_fused_kernel(x_ref, w_ref, a_ref, adj_ref, out_ref):
    """Single invocation; all heads fused.

    x_ref   : (N, Fin)
    w_ref   : (Fin, heads*Fout)       per-head W concatenated along columns
    a_ref   : (heads*Fout, 2*heads)   block-diagonal; cols (2h, 2h+1) = (a_src, a_dst)
    adj_ref : (N, N)
    out_ref : (N, heads*Fout)         lane-dense, written once
    """
    heads = a_ref.shape[1] // 2
    fout = w_ref.shape[1] // heads

    x = x_ref[...]                                         # (N, Fin)
    adj = adj_ref[...]                                     # (N, N)

    # 1) All-head linear transform: one wide MXU matmul.
    xt_all = jnp.dot(x, w_ref[...],
                     preferred_element_type=jnp.float32)   # (N, heads*Fout)

    # 2) All-head attention projections: one MXU matmul against the
    #    block-diagonal `a` matrix -> column 2h = xt_h·a_src, 2h+1 = xt_h·a_dst.
    s_all = jnp.dot(xt_all, a_ref[...],
                    preferred_element_type=jnp.float32)    # (N, 2*heads)
    s_dst_t = jnp.transpose(s_all)                         # (2*heads, N), one small XLU op

    # Edge mask & additive bias, hoisted out of the per-head loop.
    mask = adj > 0
    neg_bias = jnp.where(mask, 0.0, -1e30)                 # finite: no -inf -> NaN

    outs = []
    for h in range(heads):                                 # static unroll over heads
        # Attention logits: e[i,j] = leakyrelu(s_src[i] + s_dst[j]), masked.
        e = s_all[:, 2 * h:2 * h + 1] + s_dst_t[2 * h + 1:2 * h + 2, :]   # (N, N)
        e = jnp.maximum(e, 0.2 * e)                        # LeakyReLU(0.2)
        e = e + neg_bias

        # Softmax over neighbors j (axis=1).
        m = jnp.max(e, axis=1, keepdims=True)
        p = jnp.exp(e - m)
        attn = p * pl.reciprocal(jnp.sum(p, axis=1, keepdims=True), approx=False)
        # TODO(synk): dropout_layer(attention) is identity in eval mode.
        attn = jnp.where(mask, attn, 0.0)                  # exact adj>0 gating

        # Weighted aggregation of neighbor features (MXU).
        xt_h = xt_all[:, h * fout:(h + 1) * fout]          # (N, Fout) static slice
        outs.append(jnp.dot(attn, xt_h, preferred_element_type=jnp.float32))

    # Single lane-dense store of the concatenated heads: (N, heads*Fout).
    out_ref[...] = jnp.concatenate(outs, axis=1)


def simple_gat_forward(x, adj, W, a, *, concat=True):
    """x: (N, Fin) f32, adj: (N, N) f32, W: (heads, Fin, Fout), a: (heads, 2*Fout)."""
    heads, fin, fout = W.shape
    n = x.shape[0]

    # (heads, Fin, Fout) -> (Fin, heads*Fout): one wide matmul for all heads.
    w_all = jnp.transpose(W, (1, 0, 2)).reshape(fin, heads * fout)

    # (heads, 2*Fout) -> block-diagonal (heads*Fout, 2*heads):
    #   a_block[h*F + f, 2h + c] = a[h, c*F + f]   (c=0: a_src, c=1: a_dst)
    a3 = a.reshape(heads, 2, fout)
    a_block = jnp.zeros((heads * fout, 2 * heads), a.dtype)
    for h in range(heads):
        a_block = a_block.at[h * fout:(h + 1) * fout, 2 * h:2 * h + 2].set(
            jnp.transpose(a3[h]))

    out = pl.pallas_call(
        gat_fused_kernel,
        out_shape=jax.ShapeDtypeStruct((n, heads * fout), jnp.float32),
        in_specs=[
            pl.BlockSpec(memory_space=pltpu.MemorySpace.VMEM),   # x
            pl.BlockSpec(memory_space=pltpu.MemorySpace.VMEM),   # W_all
            pl.BlockSpec(memory_space=pltpu.MemorySpace.VMEM),   # a_block
            pl.BlockSpec(memory_space=pltpu.MemorySpace.VMEM),   # adj
        ],
        out_specs=pl.BlockSpec(memory_space=pltpu.MemorySpace.VMEM),
    )(x, w_all, a_block, adj)

    if concat:
        return out                                  # already (N, heads*Fout)
    return out.reshape(n, heads, fout).mean(axis=1)


# ------------------------- pure-JAX reference (for checking) -------------------------
def reference_forward(x, adj, W, a, *, concat=True):
    heads, Fin, Fout = W.shape
    N = x.shape[0]
    xt = jnp.einsum('nf,hfo->hno', x, W)
    s_src = jnp.einsum('hno,ho->hn', xt, a[:, :Fout])
    s_dst = jnp.einsum('hno,ho->hn', xt, a[:, Fout:])
    e = s_src[:, :, None] + s_dst[:, None, :]
    e = jnp.where(e > 0, e, 0.2 * e)
    mask = (adj > 0)[None, :, :]
    e = jnp.where(mask, e, -jnp.inf)
    attn = jax.nn.softmax(e, axis=2)
    attn = jnp.where(mask, attn, 0.0)
    hp = jnp.einsum('hij,hjo->hio', attn, xt)
    if concat:
        return jnp.transpose(hp, (1, 0, 2)).reshape(N, heads * Fout)
    return jnp.mean(hp, axis=0)


def xavier_uniform(key, shape, fan_in, fan_out):
    bound = math.sqrt(6.0 / (fan_in + fan_out))
    return jax.random.uniform(key, shape, jnp.float32, -bound, bound)


if __name__ == "__main__":
    # Small shapes consistent with the module.
    N, in_features, out_features, heads = 8, 16, 32, 4

    key = jax.random.PRNGKey(0)
    kx, kadj, kw, ka = jax.random.split(key, 4)

    # Deterministic parameter init (xavier_uniform-style bounds, PyTorch fan rules).
    W = xavier_uniform(kw, (heads, in_features, out_features),
                       fan_in=in_features * out_features,
                       fan_out=heads * out_features)
    a = xavier_uniform(ka, (heads, 2 * out_features),
                       fan_in=2 * out_features, fan_out=heads)

    # Node features and a binary adjacency with self-loops (every row has >=1 edge).
    x = jax.random.normal(kx, (N, in_features), jnp.float32)
    adj = (jax.random.uniform(kadj, (N, N)) > 0.5).astype(jnp.float32)
    adj = jnp.maximum(adj, jnp.eye(N, dtype=jnp.float32))

    out = simple_gat_forward(x, adj, W, a, concat=True)
    out = jax.block_until_ready(out)

    ref = reference_forward(x, adj, W, a, concat=True)
    assert out.shape == (N, heads * out_features)
    assert jnp.allclose(out, ref, atol=1e-4, rtol=1e-4), "mismatch vs reference"

    print("KERNEL_OK")
</pallas_src>

<mosaic_0001>
module attributes {stable_mosaic.version = 11 : i64} {
  func.func @gat_fused_kernel(%arg0: memref<8x16xf32, #tpu.memory_space<vmem>>, %arg1: memref<16x128xf32, #tpu.memory_space<vmem>>, %arg2: memref<128x8xf32, #tpu.memory_space<vmem>>, %arg3: memref<8x8xf32, #tpu.memory_space<vmem>>, %arg4: memref<8x128xf32, #tpu.memory_space<vmem>>) attributes {dimension_semantics = [], scalar_prefetch = 0 : i64, scratch_operands = 0 : i64, tpu.core_type = #tpu.core_type<tc>} {
    %c0 = arith.constant 0 : index
    %c0_0 = arith.constant 0 : index
    %0 = vector.load %arg0[%c0, %c0_0] : memref<8x16xf32, #tpu.memory_space<vmem>>, vector<8x16xf32>
    %c0_1 = arith.constant 0 : index
    %c0_2 = arith.constant 0 : index
    %1 = vector.load %arg3[%c0_1, %c0_2] : memref<8x8xf32, #tpu.memory_space<vmem>>, vector<8x8xf32>
    %c0_3 = arith.constant 0 : index
    %c0_4 = arith.constant 0 : index
    %2 = vector.load %arg1[%c0_3, %c0_4] : memref<16x128xf32, #tpu.memory_space<vmem>>, vector<16x128xf32>
    %cst = arith.constant dense<0.000000e+00> : vector<8x128xf32>
    %3 = tpu.matmul %0, %2, %cst {dimension_numbers = #tpu.dot_dimension_numbers<[1], [0], [0], [1], [0, 0, 1, 1], [], []>} : vector<8x16xf32>, vector<16x128xf32>, vector<8x128xf32> -> vector<8x128xf32>
    %c0_5 = arith.constant 0 : index
    %c0_6 = arith.constant 0 : index
    %4 = vector.load %arg2[%c0_5, %c0_6] : memref<128x8xf32, #tpu.memory_space<vmem>>, vector<128x8xf32>
    %cst_7 = arith.constant dense<0.000000e+00> : vector<8x8xf32>
    %5 = tpu.matmul %3, %4, %cst_7 {dimension_numbers = #tpu.dot_dimension_numbers<[1], [0], [0], [1], [0, 0, 1, 1], [], []>} : vector<8x128xf32>, vector<128x8xf32>, vector<8x8xf32> -> vector<8x8xf32>
    %6 = tpu.transpose %5, [1, 0] : vector<8x8xf32> -> vector<8x8xf32>
    %cst_8 = arith.constant 0.000000e+00 : f32
    %7 = vector.broadcast %cst_8 : f32 to vector<8x8xf32>
    %8 = arith.cmpf ogt, %1, %7 : vector<8x8xf32>
    %cst_9 = arith.constant 0.000000e+00 : f32
    %cst_10 = arith.constant -1.000000e+30 : f32
    %9 = vector.broadcast %cst_9 : f32 to vector<8x8xf32>
    %10 = vector.broadcast %cst_10 : f32 to vector<8x8xf32>
    %11 = arith.select %8, %9, %10 : vector<8x8xi1>, vector<8x8xf32>
    %12 = vector.extract_strided_slice %5 {offsets = [0, 0], sizes = [8, 1], strides = [1, 1]} : vector<8x8xf32> to vector<8x1xf32>
    %13 = vector.extract_strided_slice %6 {offsets = [1, 0], sizes = [1, 8], strides = [1, 1]} : vector<8x8xf32> to vector<1x8xf32>
    %14 = vector.broadcast %12 : vector<8x1xf32> to vector<8x8xf32>
    %15 = vector.broadcast %13 : vector<1x8xf32> to vector<8x8xf32>
    %16 = arith.addf %14, %15 : vector<8x8xf32>
    %cst_11 = arith.constant 2.000000e-01 : f32
    %17 = vector.broadcast %cst_11 : f32 to vector<8x8xf32>
    %18 = arith.mulf %17, %16 : vector<8x8xf32>
    %19 = arith.maximumf %16, %18 : vector<8x8xf32>
    %20 = arith.addf %19, %11 : vector<8x8xf32>
    %cst_12 = arith.constant dense<0xFF800000> : vector<8xf32>
    %21 = vector.multi_reduction <maximumf>, %20, %cst_12 [1] : vector<8x8xf32> to vector<8xf32>
    %22 = vector.shape_cast %21 : vector<8xf32> to vector<8x1xf32>
    %23 = vector.broadcast %22 : vector<8x1xf32> to vector<8x8xf32>
    %24 = arith.subf %20, %23 : vector<8x8xf32>
    %25 = math.exp %24 : vector<8x8xf32>
    %cst_13 = arith.constant dense<0.000000e+00> : vector<8xf32>
    %26 = vector.multi_reduction <add>, %25, %cst_13 [1] : vector<8x8xf32> to vector<8xf32>
    %27 = vector.shape_cast %26 : vector<8xf32> to vector<8x1xf32>
    %28 = tpu.reciprocal %27 : vector<8x1xf32> -> vector<8x1xf32>
    %29 = vector.broadcast %28 : vector<8x1xf32> to vector<8x8xf32>
    %30 = arith.mulf %25, %29 : vector<8x8xf32>
    %cst_14 = arith.constant 0.000000e+00 : f32
    %31 = vector.broadcast %cst_14 : f32 to vector<8x8xf32>
    %32 = arith.select %8, %30, %31 : vector<8x8xi1>, vector<8x8xf32>
    %33 = vector.extract_strided_slice %3 {offsets = [0, 0], sizes = [8, 32], strides = [1, 1]} : vector<8x128xf32> to vector<8x32xf32>
    %cst_15 = arith.constant dense<0.000000e+00> : vector<8x32xf32>
    %34 = tpu.matmul %32, %33, %cst_15 {dimension_numbers = #tpu.dot_dimension_numbers<[1], [0], [0], [1], [0, 0, 1, 1], [], []>} : vector<8x8xf32>, vector<8x32xf32>, vector<8x32xf32> -> vector<8x32xf32>
    %35 = vector.extract_strided_slice %5 {offsets = [0, 2], sizes = [8, 1], strides = [1, 1]} : vector<8x8xf32> to vector<8x1xf32>
    %36 = vector.extract_strided_slice %6 {offsets = [3, 0], sizes = [1, 8], strides = [1, 1]} : vector<8x8xf32> to vector<1x8xf32>
    %37 = vector.broadcast %35 : vector<8x1xf32> to vector<8x8xf32>
    %38 = vector.broadcast %36 : vector<1x8xf32> to vector<8x8xf32>
    %39 = arith.addf %37, %38 : vector<8x8xf32>
    %cst_16 = arith.constant 2.000000e-01 : f32
    %40 = vector.broadcast %cst_16 : f32 to vector<8x8xf32>
    %41 = arith.mulf %40, %39 : vector<8x8xf32>
    %42 = arith.maximumf %39, %41 : vector<8x8xf32>
    %43 = arith.addf %42, %11 : vector<8x8xf32>
    %cst_17 = arith.constant dense<0xFF800000> : vector<8xf32>
    %44 = vector.multi_reduction <maximumf>, %43, %cst_17 [1] : vector<8x8xf32> to vector<8xf32>
    %45 = vector.shape_cast %44 : vector<8xf32> to vector<8x1xf32>
    %46 = vector.broadcast %45 : vector<8x1xf32> to vector<8x8xf32>
    %47 = arith.subf %43, %46 : vector<8x8xf32>
    %48 = math.exp %47 : vector<8x8xf32>
    %cst_18 = arith.constant dense<0.000000e+00> : vector<8xf32>
    %49 = vector.multi_reduction <add>, %48, %cst_18 [1] : vector<8x8xf32> to vector<8xf32>
    %50 = vector.shape_cast %49 : vector<8xf32> to vector<8x1xf32>
    %51 = tpu.reciprocal %50 : vector<8x1xf32> -> vector<8x1xf32>
    %52 = vector.broadcast %51 : vector<8x1xf32> to vector<8x8xf32>
    %53 = arith.mulf %48, %52 : vector<8x8xf32>
    %cst_19 = arith.constant 0.000000e+00 : f32
    %54 = vector.broadcast %cst_19 : f32 to vector<8x8xf32>
    %55 = arith.select %8, %53, %54 : vector<8x8xi1>, vector<8x8xf32>
    %56 = vector.extract_strided_slice %3 {offsets = [0, 32], sizes = [8, 32], strides = [1, 1]} : vector<8x128xf32> to vector<8x32xf32>
    %cst_20 = arith.constant dense<0.000000e+00> : vector<8x32xf32>
    %57 = tpu.matmul %55, %56, %cst_20 {dimension_numbers = #tpu.dot_dimension_numbers<[1], [0], [0], [1], [0, 0, 1, 1], [], []>} : vector<8x8xf32>, vector<8x32xf32>, vector<8x32xf32> -> vector<8x32xf32>
    %58 = vector.extract_strided_slice %5 {offsets = [0, 4], sizes = [8, 1], strides = [1, 1]} : vector<8x8xf32> to vector<8x1xf32>
    %59 = vector.extract_strided_slice %6 {offsets = [5, 0], sizes = [1, 8], strides = [1, 1]} : vector<8x8xf32> to vector<1x8xf32>
    %60 = vector.broadcast %58 : vector<8x1xf32> to vector<8x8xf32>
    %61 = vector.broadcast %59 : vector<1x8xf32> to vector<8x8xf32>
    %62 = arith.addf %60, %61 : vector<8x8xf32>
    %cst_21 = arith.constant 2.000000e-01 : f32
    %63 = vector.broadcast %cst_21 : f32 to vector<8x8xf32>
    %64 = arith.mulf %63, %62 : vector<8x8xf32>
    %65 = arith.maximumf %62, %64 : vector<8x8xf32>
    %66 = arith.addf %65, %11 : vector<8x8xf32>
    %cst_22 = arith.constant dense<0xFF800000> : vector<8xf32>
    %67 = vector.multi_reduction <maximumf>, %66, %cst_22 [1] : vector<8x8xf32> to vector<8xf32>
    %68 = vector.shape_cast %67 : vector<8xf32> to vector<8x1xf32>
    %69 = vector.broadcast %68 : vector<8x1xf32> to vector<8x8xf32>
    %70 = arith.subf %66, %69 : vector<8x8xf32>
    %71 = math.exp %70 : vector<8x8xf32>
    %cst_23 = arith.constant dense<0.000000e+00> : vector<8xf32>
    %72 = vector.multi_reduction <add>, %71, %cst_23 [1] : vector<8x8xf32> to vector<8xf32>
    %73 = vector.shape_cast %72 : vector<8xf32> to vector<8x1xf32>
    %74 = tpu.reciprocal %73 : vector<8x1xf32> -> vector<8x1xf32>
    %75 = vector.broadcast %74 : vector<8x1xf32> to vector<8x8xf32>
    %76 = arith.mulf %71, %75 : vector<8x8xf32>
    %cst_24 = arith.constant 0.000000e+00 : f32
    %77 = vector.broadcast %cst_24 : f32 to vector<8x8xf32>
    %78 = arith.select %8, %76, %77 : vector<8x8xi1>, vector<8x8xf32>
    %79 = vector.extract_strided_slice %3 {offsets = [0, 64], sizes = [8, 32], strides = [1, 1]} : vector<8x128xf32> to vector<8x32xf32>
    %cst_25 = arith.constant dense<0.000000e+00> : vector<8x32xf32>
    %80 = tpu.matmul %78, %79, %cst_25 {dimension_numbers = #tpu.dot_dimension_numbers<[1], [0], [0], [1], [0, 0, 1, 1], [], []>} : vector<8x8xf32>, vector<8x32xf32>, vector<8x32xf32> -> vector<8x32xf32>
    %81 = vector.extract_strided_slice %5 {offsets = [0, 6], sizes = [8, 1], strides = [1, 1]} : vector<8x8xf32> to vector<8x1xf32>
    %82 = vector.extract_strided_slice %6 {offsets = [7, 0], sizes = [1, 8], strides = [1, 1]} : vector<8x8xf32> to vector<1x8xf32>
    %83 = vector.broadcast %81 : vector<8x1xf32> to vector<8x8xf32>
    %84 = vector.broadcast %82 : vector<1x8xf32> to vector<8x8xf32>
    %85 = arith.addf %83, %84 : vector<8x8xf32>
    %cst_26 = arith.constant 2.000000e-01 : f32
    %86 = vector.broadcast %cst_26 : f32 to vector<8x8xf32>
    %87 = arith.mulf %86, %85 : vector<8x8xf32>
    %88 = arith.maximumf %85, %87 : vector<8x8xf32>
    %89 = arith.addf %88, %11 : vector<8x8xf32>
    %cst_27 = arith.constant dense<0xFF800000> : vector<8xf32>
    %90 = vector.multi_reduction <maximumf>, %89, %cst_27 [1] : vector<8x8xf32> to vector<8xf32>
    %91 = vector.shape_cast %90 : vector<8xf32> to vector<8x1xf32>
    %92 = vector.broadcast %91 : vector<8x1xf32> to vector<8x8xf32>
    %93 = arith.subf %89, %92 : vector<8x8xf32>
    %94 = math.exp %93 : vector<8x8xf32>
    %cst_28 = arith.constant dense<0.000000e+00> : vector<8xf32>
    %95 = vector.multi_reduction <add>, %94, %cst_28 [1] : vector<8x8xf32> to vector<8xf32>
    %96 = vector.shape_cast %95 : vector<8xf32> to vector<8x1xf32>
    %97 = tpu.reciprocal %96 : vector<8x1xf32> -> vector<8x1xf32>
    %98 = vector.broadcast %97 : vector<8x1xf32> to vector<8x8xf32>
    %99 = arith.mulf %94, %98 : vector<8x8xf32>
    %cst_29 = arith.constant 0.000000e+00 : f32
    %100 = vector.broadcast %cst_29 : f32 to vector<8x8xf32>
    %101 = arith.select %8, %99, %100 : vector<8x8xi1>, vector<8x8xf32>
    %102 = vector.extract_strided_slice %3 {offsets = [0, 96], sizes = [8, 32], strides = [1, 1]} : vector<8x128xf32> to vector<8x32xf32>
    %cst_30 = arith.constant dense<0.000000e+00> : vector<8x32xf32>
    %103 = tpu.matmul %101, %102, %cst_30 {dimension_numbers = #tpu.dot_dimension_numbers<[1], [0], [0], [1], [0, 0, 1, 1], [], []>} : vector<8x8xf32>, vector<8x32xf32>, vector<8x32xf32> -> vector<8x32xf32>
    %104 = tpu.concatenate %34, %57, %80, %103 in 1 : vector<8x32xf32>, vector<8x32xf32>, vector<8x32xf32>, vector<8x32xf32> -> vector<8x128xf32>
    %c0_31 = arith.constant 0 : index
    %c0_32 = arith.constant 0 : index
    %105 = vector.load %arg4[%c0_31, %c0_32] : memref<8x128xf32, #tpu.memory_space<vmem>>, vector<8x128xf32>
    tpu.vector_store %arg4[%c0_31, %c0_32], %104 {strides = array<i32>} : memref<8x128xf32, #tpu.memory_space<vmem>>, vector<8x128xf32>,
    return
  }
}

</mosaic_0001>

<bundles_post_ra>
// kernel: tpu_custom_call.1
= control target key start
LH: loop header
LB: loop body
LE: loop exit
PB: predicated region body
PF: predicated region fallthrough
CT: control target
= control target key end

     0   :  { %vm22_vm0 = vcmask 130048   ;;  %s600_s0 = inlined_call_operand.vmem [shape: f32[8,16], index: 0, kind: input, shape index: {}]   ;;  %s601_s1 = inlined_call_operand.vmem [shape: f32[16,128], index: 1, kind: input, shape index: {}]   ;;  %s602_s2 = inlined_call_operand.vmem [shape: f32[128,8], index: 2, kind: input, shape index: {}]   ;;  %s603_s3 = inlined_call_operand.vmem [shape: f32[8,8], index: 3, kind: input, shape index: {}]   ;;  %s604_s4 = inlined_call_operand.hbm [shape: f32[8,128], index: 4, kind: output, shape index: {}]  }
   0x1   :  { %v21_v0 = vld [vmem:[%s601_s1 + $0x8] sm:$0xff]  ;;  %v20_v1 = vld [vmem:[%s601_s1] sm:$0xff]  ;;  %v61_v3 = vld [vmem:[%s602_s2 + $0x78] sm:$0xff] }
   0x2   :  { %40 = vmatpush.msra.mxu0 %v21_v0  ;;  %v18_v2 = vld [vmem:[%s600_s0] sm:$0xff]  ;;  %v60_v4 = vld [vmem:[%s602_s2 + $0x70] sm:$0xff]  ;;  %62 = vmatpush.msra.mxu1 %v61_v3  ;;  %v59_v5 = vld [vmem:[%s602_s2 + $0x68] sm:$0xff] }
   0x3   :  { %v58_v6 = vld [vmem:[%s602_s2 + $0x60] sm:$0xff] }
   0x4   :  { %41 = vmatpush.msra.mxu0 %v20_v1  ;;  %63 = vmatpush.msra.mxu1 %v60_v4 }
   0x5   :  { %391 = vmatmul.msk.f32.vlgmr.msra.gmra.mxu0 %vm22_vm0, %v18_v2 }
   0x6   :  { %64 = vmatpush.msra.mxu1 %v59_v5 }
   0x7   :  { %9 = vsyncpa [#allocation3], 0  ;;  %v57_v7 = vld [vmem:[%s602_s2 + $0x58] sm:$0xff]  ;;  %v56_v8 = vld [vmem:[%s602_s2 + $0x50] sm:$0xff]  ;;  %v453_v19 = vmov 4   ;;  %v454_v20 = vmov 0  }
   0x8   :  { %65 = vmatpush.msra.mxu1 %v58_v6  ;;  %v55_v9 = vld [vmem:[%s602_s2 + $0x48] sm:$0xff]  ;;  %v54_v10 = vld [vmem:[%s602_s2 + $0x40] sm:$0xff]  ;;  %v53_v11 = vld [vmem:[%s602_s2 + $0x38] sm:$0xff]  ;;  %408 = vset.pattern.permute.xlu1 %v453_v19  ;;  %v455_v23 = vmov 6   ;;  %v456_v24 = vmov 2   ;;  %vm126_vm2 = vcmask 64512  }
   0x9   :  { %v52_v12 = vld [vmem:[%s602_s2 + $0x30] sm:$0xff]  ;;  %v51_v13 = vld [vmem:[%s602_s2 + $0x28] sm:$0xff]  ;;  %v50_v14 = vld [vmem:[%s602_s2 + $0x20] sm:$0xff]  ;;  %406 = vset.pattern.permute.xlu0 %v454_v20  ;;  %v457_v42 = vmov -1e+30   ;;  %s459_s26 = smov 32  }
   0xa   :  { %66 = vmatpush.msra.mxu1 %v57_v7  ;;  %v49_v15 = vld [vmem:[%s602_s2 + $0x18] sm:$0xff]  ;;  %v48_v16 = vld [vmem:[%s602_s2 + $0x10] sm:$0xff]  ;;  %v47_v17 = vld [vmem:[%s602_s2 + $0x8] sm:$0xff]  ;;  %s460_s1 = smov 64   ;;  %s461_s27 = smov [#allocation2]  }
   0xb   :  { %v46_v18 = vld [vmem:[%s602_s2] sm:$0xff]  ;;  %s380_s0 = sshll.u32 %s461_s27, 4  ;;  %s382_s30 = sshll.u32 %s604_s4, 4  ;;  %s381_s0 = int_to_ptr.vmem [resolvable:$true] %s380_s0  ;;  %s383_s30 = int_to_ptr.hbm [resolvable:$true] %s382_s30 }
   0xc   :  { %67 = vmatpush.msra.mxu1 %v56_v8  ;;  %v551_v28 = vld [vmem:[%s603_s3] sm:$0xff]  ;;  %s458_s3 = smov 96  }
   0xd   :  { %vm114_vm1 = vcmp.gt.f32.partialorder %v551_v28, 0.0 }
   0xe   :  { %68 = vmatpush.msra.mxu1 %v55_v9  ;;  %v115_v43 = vsel %vm114_vm1, 0.0, %v457_v42 }
  0x10   :  { %69 = vmatpush.msra.mxu1 %v54_v10 }
  0x12   :  { %70 = vmatpush.msra.mxu1 %v53_v11 }
  0x14   :  { %71 = vmatpush.msra.mxu1 %v52_v12 }
  0x16   :  { %72 = vmatpush.msra.mxu1 %v51_v13 }
  0x18   :  { %73 = vmatpush.msra.mxu1 %v50_v14 }
  0x1a   :  { %74 = vmatpush.msra.mxu1 %v49_v15 }
  0x1c   :  { %75 = vmatpush.msra.mxu1 %v48_v16 }
  0x1e   :  { %76 = vmatpush.msra.mxu1 %v47_v17 }
  0x20   :  { %77 = vmatpush.msra.mxu1 %v46_v18 }
  0x82   :  { %v544_v21 = vpop.f32.mrf.mxu0 }
  0x83   :  { %78 = vmatmul.f32.vlgmr.msra.gmra.mxu1 %v544_v21  ;;  %170 = vmatpush.msra.mxu2 %v544_v21 }
 0x100   :  { %v79_v22 = vpop.f32.mrf.mxu1 }
 0x101   :  { %82 = vxpose.xlu2.b32.start.end [1/1] (short) (narrow) %v79_v22, 8  ;;  %237 = vperm.xlu1 %408, %v79_v22  }
 0x102   :  { %118 = vperm.xlu0 %406, %v79_v22  }
 0x109   :  { %409 = vset.pattern.permute.xlu1 %v455_v23 }
 0x10a   :  { %407 = vset.pattern.permute.xlu0 %v456_v24  ;;  %297 = vperm.xlu1 %409, %v79_v22  }
 0x10b   :  { %176 = vperm.xlu0 %407, %v79_v22  }
 0x113   :  { %410 = vset.pattern.permute.xlu0 %v455_v23 }
 0x173   :  { %v238_v26 = vpop.permute.xlu1 %237 }
 0x174   :  { %v119_v25 = vpop.permute.xlu0 %118 }
 0x17c   :  { %v298_v34 = vpop.permute.xlu1 %297 }
 0x17d   :  { %v177_v33 = vpop.permute.xlu0 %176 }
 0x19a   :  { %v98_v27 = vpop.trf.xlu2 }
 0x19b   :  { %v121_v29 = vperm.slane %v98_v27, 1  ;;  %v179_v30 = vperm.slane %v98_v27, 3  ;;  %v240_v31 = vperm.slane %v98_v27, 5  ;;  %v300_v32 = vperm.slane %v98_v27, 7 }
 0x19d   :  { %v241_v35 = vadd.f32 %v240_v31, %v238_v26  ;;  %v122_v36 = vadd.f32 %v121_v29, %v119_v25  ;;  %v180_v37 = vadd.f32 %v179_v30, %v177_v33  ;;  %v301_v38 = vadd.f32 %v300_v32, %v298_v34 }
 0x19f   :  { %v242_v39 = vmul.f32 0.2, %v241_v35  ;;  %v123_v40 = vmul.f32 0.2, %v122_v36  ;;  %v181_v41 = vmul.f32 0.2, %v180_v37 }
 0x1a0   :  { %v302_v47 = vmul.f32 0.2, %v301_v38 }
 0x1a1   :  { %v243_v44 = vmax.f32 %v241_v35, %v242_v39  ;;  %v124_v45 = vmax.f32 %v122_v36, %v123_v40  ;;  %v182_v46 = vmax.f32 %v180_v37, %v181_v41 }
 0x1a2   :  { %v303_v54 = vmax.f32 %v301_v38, %v302_v47 }
 0x1a3   :  { %v244_v48 = vadd.f32 %v243_v44, %v115_v43  ;;  %v125_v49 = vadd.f32 %v124_v45, %v115_v43  ;;  %v183_v50 = vadd.f32 %v182_v46, %v115_v43 }
 0x1a4   :  { %v304_v55 = vadd.f32 %v303_v54, %v115_v43 }
 0x1a5   :  { %v245_v51 = vsel %vm126_vm2, %v244_v48, -inf  ;;  %v127_v52 = vsel %vm126_vm2, %v125_v49, -inf  ;;  %v184_v53 = vsel %vm126_vm2, %v183_v50, -inf }
 0x1a6   :  { %246 = vmax.xlane.f32.xlu0 %v245_v51  ;;  %128 = vmax.xlane.f32.xlu2 %v127_v52  ;;  %v305_v56 = vsel %vm126_vm2, %v304_v55, -inf }
 0x1a7   :  { %185 = vmax.xlane.f32.xlu1 %v184_v53 }
 0x1af   :  { %306 = vmax.xlane.f32.xlu1 %v305_v56 }
 0x1ba   :  { %210 = vrot.lane.b32.xlu0 %v544_v21, %s458_s3 }
 0x219   :  { %v129_v57 = vpop.xlane.xlu2 %128  ;;  %v247_v58 = vpop.xlane.xlu0 %246 }
 0x21a   :  { %v130_v59 = vsub.f32 %v125_v49, %v129_v57  ;;  %v186_v60 = vpop.xlane.xlu1 %185  ;;  %v248_v63 = vsub.f32 %v244_v48, %v247_v58 }
 0x21b   :  { %v187_v61 = vsub.f32 %v183_v50, %v186_v60 }
 0x21c   :  { %v131_v62 = vmul.f32 1.442695, %v130_v59  ;;  %v249_v1 = vmul.f32 1.442695, %v248_v63 }
 0x21d   :  { %v188_v0 = vmul.f32 1.442695, %v187_v61 }
 0x21e   :  { %411 = vpow2.f32 %v131_v62 }
 0x21f   :  { %413 = vpow2.f32 %v188_v0 }
 0x220   :  { %415 = vpow2.f32 %v249_v1 }
 0x222   :  { %v307_v2 = vpop.xlane.xlu1 %306 }
 0x223   :  { %v308_v3 = vsub.f32 %v304_v55, %v307_v2 }
 0x224   :  { %v412_v4 = vpop.eup %411 }
 0x225   :  { %v562_v5 = vpop.eup %413  ;;  %v309_v6 = vmul.f32 1.442695, %v308_v3  ;;  %v133_v7 = vsel %vm126_vm2, %v412_v4, 0.0 }
 0x226   :  { %134 = vadd.xlane.f32.xlu0 %v133_v7  ;;  %v190_v8 = vsel %vm126_vm2, %v562_v5, 0.0  ;;  %v567_v9 = vpop.eup %415 }
 0x227   :  { %417 = vpow2.f32 %v309_v6  ;;  %191 = vadd.xlane.f32.xlu1 %v190_v8  ;;  %v251_v12 = vsel %vm126_vm2, %v567_v9, 0.0 }
 0x22c   :  { %v211_v10 = vpop.permute.xlu0 %210 }
 0x22d   :  { %v569_v11 = vpop.eup %417  ;;  %231 = vmatpush.msra.mxu3 %v211_v10 }
 0x22e   :  { %v311_v13 = vsel %vm126_vm2, %v569_v11, 0.0  ;;  %252 = vadd.xlane.f32.xlu0 %v251_v12 }
 0x22f   :  { %312 = vadd.xlane.f32.xlu1 %v311_v13 }
 0x242   :  { %330 = vrot.lane.b32.xlu0 %v544_v21, %s459_s26 }
 0x248   :  { %270 = vrot.lane.b32.xlu1 %v544_v21, %s460_s1 }
 0x299   :  { %v135_v14 = vpop.xlane.xlu0 %134 }
 0x29a   :  { %v192_v15 = vpop.xlane.xlu1 %191  ;;  %419 = vrcp.f32 %v135_v14  ;;  %v147_v25 = vand.u32 2147483648, %v135_v14  ;;  %v145_v29 = vand.u32 2147483647, %v135_v14  ;;  %vm141_vm5 = vweird.f32 %v135_v14 }
 0x29b   :  { %421 = vrcp.f32 %v192_v15  ;;  %v204_v26 = vand.u32 2147483648, %v192_v15  ;;  %v202_v30 = vand.u32 2147483647, %v192_v15  ;;  %vm198_vm6 = vweird.f32 %v192_v15 }
 0x29c   :  { %v148_v33 = vor.u32 1.1754944e-38, %v147_v25  ;;  %vm146_vm8 = vcmp.eq.f32.partialorder %v145_v29, 8.507059e+37 }
 0x29d   :  { %v205_v36 = vor.u32 1.1754944e-38, %v204_v26  ;;  %vm203_vm10 = vcmp.eq.f32.partialorder %v202_v30, 8.507059e+37 }
 0x2a0   :  { %v420_v16 = vpop.eup %419 }
 0x2a1   :  { %v422_v17 = vpop.eup %421  ;;  %v137_v18 = vmul.f32 %v420_v16, %v135_v14  ;;  %v253_v19 = vpop.xlane.xlu0 %252  ;;  %vm142_vm3 = vweird.f32 %v420_v16 }
 0x2a2   :  { %v194_v20 = vmul.f32 %v422_v17, %v192_v15  ;;  %v313_v22 = vpop.xlane.xlu1 %312  ;;  %423 = vrcp.f32 %v253_v19  ;;  %vm199_vm4 = vweird.f32 %v422_v17  ;;  %vm143_vm7 = vmor %vm141_vm5, %vm142_vm3  ;;  %v265_v52 = vand.u32 2147483648, %v253_v19 }
 0x2a3   :  { %v138_v23 = vsub.f32 1.0, %v137_v18  ;;  %425 = vrcp.f32 %v313_v22  ;;  %vm200_vm9 = vmor %vm198_vm6, %vm199_vm4  ;;  %v323_v46 = vand.u32 2147483647, %v313_v22  ;;  %v325_v48 = vand.u32 2147483648, %v313_v22 }
 0x2a4   :  { %v195_v24 = vsub.f32 1.0, %v194_v20  ;;  %vm259_vm13 = vweird.f32 %v253_v19  ;;  %v263_v55 = vand.u32 2147483647, %v253_v19  ;;  %vm319_vm14 = vweird.f32 %v313_v22 }
 0x2a5   :  { %v139_v27 = vmul.f32 %v420_v16, %v138_v23  ;;  %v326_v57 = vor.u32 1.1754944e-38, %v325_v48  ;;  %v266_v59 = vor.u32 1.1754944e-38, %v265_v52  ;;  %vm324_vm3 = vcmp.eq.f32.partialorder %v323_v46, 8.507059e+37 }
 0x2a6   :  { %v196_v21 = vmul.f32 %v422_v17, %v195_v24  ;;  %vm264_vm4 = vcmp.eq.f32.partialorder %v263_v55, 8.507059e+37  ;;  %vm368_vm5 = vcmask 261120   ;;  %vm370_vm6 = vcmask 523264  }
 0x2a7   :  { %v140_v31 = vadd.f32 %v420_v16, %v139_v27 }
 0x2a8   :  { %v424_v32 = vpop.eup %423  ;;  %v197_v34 = vadd.f32 %v422_v17, %v196_v21 }
 0x2a9   :  { %v426_v35 = vpop.eup %425  ;;  %v255_v37 = vmul.f32 %v424_v32, %v253_v19  ;;  %v144_v38 = vsel %vm143_vm7, %v420_v16, %v140_v31  ;;  %vm260_vm11 = vweird.f32 %v424_v32 }
 0x2aa   :  { %v315_v39 = vmul.f32 %v426_v35, %v313_v22  ;;  %v149_v40 = vsel %vm146_vm8, %v148_v33, %v144_v38  ;;  %v201_v41 = vsel %vm200_vm9, %v422_v17, %v197_v34  ;;  %vm320_vm12 = vweird.f32 %v426_v35  ;;  %vm261_vm15 = vmor %vm259_vm13, %vm260_vm11 }
 0x2ab   :  { %v256_v42 = vsub.f32 1.0, %v255_v37  ;;  %v150_v43 = vmul.f32 %v412_v4, %v149_v40  ;;  %v206_v44 = vsel %vm203_vm10, %v205_v36, %v201_v41  ;;  %vm321_vm0 = vmor %vm319_vm14, %vm320_vm12 }
 0x2ac   :  { %v316_v45 = vsub.f32 1.0, %v315_v39  ;;  %v207_v47 = vmul.f32 %v562_v5, %v206_v44 }
 0x2ad   :  { %v257_v49 = vmul.f32 %v424_v32, %v256_v42  ;;  %v151_v50 = vsel %vm114_vm1, %v150_v43, 0.0 }
 0x2ae   :  { %v317_v51 = vmul.f32 %v426_v35, %v316_v45  ;;  %392 = vmatmul.msk.f32.vlgmr.msra.gmra.mxu2 %vm126_vm2, %v151_v50  ;;  %v208_v53 = vsel %vm114_vm1, %v207_v47, 0.0 }
 0x2af   :  { %v258_v54 = vadd.f32 %v424_v32, %v257_v49  ;;  %393 = vmatmul.msk.f32.vlgmr.msra.gmra.mxu3 %vm126_vm2, %v208_v53 }
 0x2b0   :  { %v318_v56 = vadd.f32 %v426_v35, %v317_v51 }
 0x2b1   :  { %v262_v58 = vsel %vm261_vm15, %v424_v32, %v258_v54 }
 0x2b2   :  { %v322_v60 = vsel %vm321_vm0, %v426_v35, %v318_v56  ;;  %v267_v0 = vsel %vm264_vm4, %v266_v59, %v262_v58 }
 0x2b3   :  { %v327_v61 = vsel %vm324_vm3, %v326_v57, %v322_v60  ;;  %v268_v2 = vmul.f32 %v567_v9, %v267_v0 }
 0x2b4   :  { %v331_v62 = vpop.permute.xlu0 %330  ;;  %v328_v63 = vmul.f32 %v569_v11, %v327_v61 }
 0x2b5   :  { %351 = vmatpush.msrb.mxu3 %v331_v62  ;;  %v269_v4 = vsel %vm114_vm1, %v268_v2, 0.0 }
 0x2b6   :  { %v329_v1 = vsel %vm114_vm1, %v328_v63, 0.0  ;;  %vm372_vm1 = vcmask 785408  }
 0x2b7   :  { %395 = vmatmul.msk.f32.vlgmr.msrb.gmra.mxu3 %vm126_vm2, %v329_v1 }
 0x2ba   :  { %v271_v3 = vpop.permute.xlu1 %270 }
 0x2bb   :  { %291 = vmatpush.msrb.mxu2 %v271_v3 }
 0x2bc   :  { %394 = vmatmul.msk.f32.vlgmr.msrb.gmra.mxu2 %vm126_vm2, %v269_v4 }
 0x331   :  { %v172_v6 = vpop.f32.mrf.mxu2 }
 0x332   :  { %v233_v5 = vpop.f32.mrf.mxu3 }
 0x333   :  { %357 = vrot.lane.b32.xlu1 %v233_v5, %s459_s26 }
 0x33a   :  { %v353_v7 = vpop.f32.mrf.mxu3 }
 0x33b   :  { %365 = vrot.lane.b32.xlu1 %v353_v7, %s458_s3 }
 0x33f   :  { %v293_v8 = vpop.f32.mrf.mxu2 }
 0x340   :  { %361 = vrot.lane.b32.xlu0 %v293_v8, %s460_s1 }
 0x3a5   :  { %v358_v10 = vpop.permute.xlu1 %357 }
 0x3a6   :  { %v369_v28 = vsel %vm368_vm5, %v172_v6, %v358_v10 }
 0x3ad   :  { %v366_v11 = vpop.permute.xlu1 %365 }
 0x3b2   :  { %v362_v9 = vpop.permute.xlu0 %361 }
 0x3b3   :  { %v371_v12 = vsel %vm370_vm6, %v369_v28, %v362_v9 }
 0x3b4   :  { %v373_v13 = vsel %vm372_vm1, %v371_v12, %v366_v11 }
 0x3b5   :  { %374 = vst [vmem:[#allocation2] sm:$0xff] %v373_v13 }
 0x3b6   :  { %385 = dma.vmem_to_hbm [thread:$0]  %s381_s0, 128, %s383_s30, [#allocation3]  }
 0x3b7   :  { %451 = dma.done.wait [#allocation3], 128  }
 0x3b8   :  { %452 = vsyncadd [#allocation3], 4294967168 }
 0x3b9   :  { %390 = vsyncpa [#allocation3], 1 }

</bundles_post_ra>
